<compile_context>
chip_gen: v7x
topology: tpu7x:2x2x1
jax: 0.10.0
libtpu: 0.0.40
codegen_flags: <defaults>
</compile_context>

<pallas_src>
import jax
import jax.numpy as jnp
from jax.experimental import pallas as pl
from jax.experimental.pallas import tpu as pltpu


def attention1d_kernel(h_ref, w_ref, r_ref, alpha_ref):
    # h_ref:     (Bblk, T, C)  VMEM  -- block of H in its native dtype
    # w_ref:     (1, C)        VMEM  -- Linear weight (out_features = 1), f32
    # r_ref:     (Bblk, C)     VMEM  -- attention-pooled output
    # alpha_ref: (Bblk, T)     VMEM  -- attention weights
    w = w_ref[...].astype(jnp.float32)                       # (1, C)

    # logits[b, t] = sum_c tanh(H[b, t, c]) * W[c]
    # (EUP tanh, VPU multiply, XLU lane reduction -- no MXU, no bias: the
    #  scalar bias is shift-invariant under the softmax below.)
    m = jnp.tanh(h_ref[...].astype(jnp.float32))             # (Bblk, T, C) f32
    logits = jnp.sum(m * w[None, :, :], axis=-1)             # (Bblk, T) f32

    # Softmax over T (lane axis), f32 throughout.
    mx = jnp.max(logits, axis=-1, keepdims=True)             # (Bblk, 1)
    e = jnp.exp(logits - mx)                                  # (Bblk, T)
    denom = jnp.sum(e, axis=-1, keepdims=True)                # (Bblk, 1)
    # EUP approx reciprocal + one Newton refinement -> ~f32-exact, no divide.
    inv = pl.reciprocal(denom, approx=True)
    inv = inv * (2.0 - denom * inv)
    alpha = e * inv                                           # (Bblk, T) f32

    # r[b, c] = sum_t H[b, t, c] * alpha[b, t]
    # (VPU multiply with f32 accumulation, XLU sublane reduction.)
    r = jnp.sum(h_ref[...].astype(jnp.float32) * alpha[:, :, None], axis=1)

    r_ref[...] = r.astype(r_ref.dtype)
    alpha_ref[...] = alpha.astype(alpha_ref.dtype)


def _pick_batch_block(B, T, C, h_itemsize, steady_budget_bytes=36 << 20):
    """Pick Bblk: largest sublane-aligned divisor of B fitting the VMEM budget.

    Budget accounts for the real steady-state footprint per grid step:
      2 x double-buffered native-dtype H block + ~2 full-size f32 temporaries
      (tanh result, upcast H during the r reduction). Outputs/weight are tiny.
    Alignment: bblk is the sublane dim of the (bblk, C)/(bblk, T) out_specs,
    so require bblk % 8 == 0 or bblk == B (no unaligned fallback).
    Mildly prefers >= 2 grid steps (keeps both TensorCores busy on v7x) when
    that does not shrink the block below half of the largest fitting one.
    """
    per_elem = 2 * h_itemsize + 8          # double-buffered input + f32 temps

    def fits(d):
        return d * T * C * per_elem <= steady_budget_bytes

    divisors = [d for d in range(1, B + 1) if B % d == 0]
    aligned = [d for d in divisors if d % 8 == 0 or d == B]   # never empty (B is in it)
    good = [d for d in aligned if fits(d)] or [min(aligned)]

    best = max(good)
    multi = [d for d in good if B // d >= 2]
    if multi and 2 * max(multi) >= best:
        best = max(multi)
    return best


def attention1d(H, weight, bias=None):
    """H: (B, T, C); weight: (1, C); bias: (1,) (unused by the math -- the
    softmax is shift-invariant in the single-output-unit bias).
    Returns (r (B, C), alpha (B, T)) in H.dtype (matches the PyTorch module's
    dtype behaviour; for bf16 inputs alpha is stored in bf16)."""
    del bias  # softmax over T is invariant to a scalar logit shift
    B, T, C = H.shape
    out_dtype = H.dtype
    w2 = weight.reshape(1, C).astype(jnp.float32)

    bblk = _pick_batch_block(B, T, C, jnp.dtype(H.dtype).itemsize)
    grid = (B // bblk,)

    r, alpha = pl.pallas_call(
        attention1d_kernel,
        out_shape=(
            jax.ShapeDtypeStruct((B, C), out_dtype),
            jax.ShapeDtypeStruct((B, T), out_dtype),
        ),
        grid_spec=pltpu.PrefetchScalarGridSpec(
            num_scalar_prefetch=0,
            grid=grid,
            in_specs=[
                pl.BlockSpec((bblk, T, C), lambda i: (i, 0, 0)),  # H block (native dtype)
                pl.BlockSpec((1, C), lambda i: (0, 0)),           # weight (shared)
            ],
            out_specs=[
                pl.BlockSpec((bblk, C), lambda i: (i, 0)),        # r (lane-dense)
                pl.BlockSpec((bblk, T), lambda i: (i, 0)),        # alpha (lane-dense)
            ],
        ),
        compiler_params=pltpu.CompilerParams(
            dimension_semantics=("parallel",),
            # Above the 16/32 MiB scoped defaults (v5e / v6e-v7x); stays under
            # v7x's 64 MiB physical VMEM per TensorCore with headroom.
            vmem_limit_bytes=48 * 1024 * 1024,
        ),
    )(H, w2)

    return r, alpha


def attention1d_ref(H, weight, bias):
    """Pure-JAX reference mirroring the PyTorch forward (bias included)."""
    M = jnp.tanh(H)
    logits = jnp.einsum("btc,oc->bto", M, weight)[..., 0] + bias[0]   # (B, T)
    alpha = jax.nn.softmax(logits, axis=1)
    r = jnp.sum(H * alpha[..., None], axis=1)
    return r, alpha


if __name__ == "__main__":
    B, T, C = 2, 8, 32  # batch, sequence length, in_channel

    key = jax.random.PRNGKey(0)
    k_h, k_w, k_b = jax.random.split(key, 3)

    H = jax.random.normal(k_h, (B, T, C), dtype=jnp.float32)
    # nn.Linear(in_channel, 1): weight (1, C), bias (1,) -- synthetic init
    bound = 1.0 / (C ** 0.5)
    weight = jax.random.uniform(k_w, (1, C), dtype=jnp.float32, minval=-bound, maxval=bound)
    bias = jax.random.uniform(k_b, (1,), dtype=jnp.float32, minval=-bound, maxval=bound)

    r, alpha = attention1d(H, weight, bias)
    r = jax.block_until_ready(r)
    alpha = jax.block_until_ready(alpha)

    r_ref, alpha_ref = attention1d_ref(H, weight, bias)
    assert r.shape == (B, C) and alpha.shape == (B, T)
    # Pure VPU/XLU f32 path (no MXU rounding); only the Newton-refined
    # reciprocal differs from an exact divide -> essentially f32-exact.
    assert jnp.allclose(r, r_ref, atol=1e-4, rtol=1e-4), float(jnp.max(jnp.abs(r - r_ref)))
    assert jnp.allclose(alpha, alpha_ref, atol=1e-4, rtol=1e-4), float(jnp.max(jnp.abs(alpha - alpha_ref)))

    print("KERNEL_OK")
</pallas_src>

<mosaic_0001>
module attributes {stable_mosaic.version = 11 : i64} {
  func.func @attention1d_kernel(%arg0: i32, %arg1: memref<2x8x32xf32, #tpu.memory_space<vmem>>, %arg2: memref<1x32xf32, #tpu.memory_space<vmem>>, %arg3: memref<2x32xf32, #tpu.memory_space<vmem>>, %arg4: memref<2x8xf32, #tpu.memory_space<vmem>>) attributes {dimension_semantics = [#tpu.dimension_semantics<parallel>], iteration_bounds = array<i64: 1>, scalar_prefetch = 0 : i64, scratch_operands = 0 : i64, tpu.core_type = #tpu.core_type<tc>, window_params = [{transform_indices = @transform_0, window_bounds = array<i64: 2, 8, 32>}, {pipeline_mode = #tpu.pipeline_mode<synchronous>, transform_indices = @transform_1, window_bounds = array<i64: 1, 32>}, {transform_indices = @transform_2, window_bounds = array<i64: 2, 32>}, {transform_indices = @transform_3, window_bounds = array<i64: 2, 8>}]} {
    %c0 = arith.constant 0 : index
    %c0_0 = arith.constant 0 : index
    %0 = vector.load %arg2[%c0, %c0_0] : memref<1x32xf32, #tpu.memory_space<vmem>>, vector<1x32xf32>
    %c0_1 = arith.constant 0 : index
    %c0_2 = arith.constant 0 : index
    %c0_3 = arith.constant 0 : index
    %1 = vector.load %arg1[%c0_1, %c0_2, %c0_3] : memref<2x8x32xf32, #tpu.memory_space<vmem>>, vector<2x8x32xf32>
    %2 = math.tanh %1 : vector<2x8x32xf32>
    %3 = vector.shape_cast %0 : vector<1x32xf32> to vector<1x1x32xf32>
    %4 = vector.broadcast %3 : vector<1x1x32xf32> to vector<2x8x32xf32>
    %5 = arith.mulf %2, %4 : vector<2x8x32xf32>
    %cst = arith.constant dense<0.000000e+00> : vector<2x8xf32>
    %6 = vector.multi_reduction <add>, %5, %cst [2] : vector<2x8x32xf32> to vector<2x8xf32>
    %cst_4 = arith.constant dense<0xFF800000> : vector<2xf32>
    %7 = vector.multi_reduction <maximumf>, %6, %cst_4 [1] : vector<2x8xf32> to vector<2xf32>
    %8 = vector.shape_cast %7 : vector<2xf32> to vector<2x1xf32>
    %9 = vector.broadcast %8 : vector<2x1xf32> to vector<2x8xf32>
    %10 = arith.subf %6, %9 : vector<2x8xf32>
    %11 = math.exp %10 : vector<2x8xf32>
    %cst_5 = arith.constant dense<0.000000e+00> : vector<2xf32>
    %12 = vector.multi_reduction <add>, %11, %cst_5 [1] : vector<2x8xf32> to vector<2xf32>
    %13 = vector.shape_cast %12 : vector<2xf32> to vector<2x1xf32>
    %14 = tpu.reciprocal %13 {approx = true} : vector<2x1xf32> -> vector<2x1xf32>
    %15 = arith.mulf %13, %14 : vector<2x1xf32>
    %cst_6 = arith.constant 2.000000e+00 : f32
    %16 = vector.broadcast %cst_6 : f32 to vector<2x1xf32>
    %17 = arith.subf %16, %15 : vector<2x1xf32>
    %18 = arith.mulf %14, %17 : vector<2x1xf32>
    %19 = vector.broadcast %18 : vector<2x1xf32> to vector<2x8xf32>
    %20 = arith.mulf %11, %19 : vector<2x8xf32>
    %c0_7 = arith.constant 0 : index
    %c0_8 = arith.constant 0 : index
    %c0_9 = arith.constant 0 : index
    %21 = vector.load %arg1[%c0_7, %c0_8, %c0_9] : memref<2x8x32xf32, #tpu.memory_space<vmem>>, vector<2x8x32xf32>
    %22 = vector.shape_cast %20 : vector<2x8xf32> to vector<2x8x1xf32>
    %23 = vector.broadcast %22 : vector<2x8x1xf32> to vector<2x8x32xf32>
    %24 = arith.mulf %21, %23 : vector<2x8x32xf32>
    %cst_10 = arith.constant dense<0.000000e+00> : vector<2x32xf32>
    %25 = vector.multi_reduction <add>, %24, %cst_10 [1] : vector<2x8x32xf32> to vector<2x32xf32>
    %c0_11 = arith.constant 0 : index
    %c0_12 = arith.constant 0 : index
    %26 = vector.load %arg3[%c0_11, %c0_12] : memref<2x32xf32, #tpu.memory_space<vmem>>, vector<2x32xf32>
    tpu.vector_store %arg3[%c0_11, %c0_12], %25 {strides = array<i32>} : memref<2x32xf32, #tpu.memory_space<vmem>>, vector<2x32xf32>,
    %c0_13 = arith.constant 0 : index
    %c0_14 = arith.constant 0 : index
    %27 = vector.load %arg4[%c0_13, %c0_14] : memref<2x8xf32, #tpu.memory_space<vmem>>, vector<2x8xf32>
    tpu.vector_store %arg4[%c0_13, %c0_14], %20 {strides = array<i32>} : memref<2x8xf32, #tpu.memory_space<vmem>>, vector<2x8xf32>,
    return
  }
  func.func @transform_0(%arg0: i32) -> (i32, i32, i32) {
    %c0_i32 = arith.constant 0 : i32
    %c0_i32_0 = arith.constant 0 : i32
    %c0_i32_1 = arith.constant 0 : i32
    return %arg0, %c0_i32, %c0_i32_0 : i32, i32, i32
  }
  func.func @transform_1(%arg0: i32) -> (i32, i32) {
    %c0_i32 = arith.constant 0 : i32
    %c0_i32_0 = arith.constant 0 : i32
    %c0_i32_1 = arith.constant 0 : i32
    return %c0_i32, %c0_i32_0 : i32, i32
  }
  func.func @transform_2(%arg0: i32) -> (i32, i32) {
    %c0_i32 = arith.constant 0 : i32
    %c0_i32_0 = arith.constant 0 : i32
    return %arg0, %c0_i32 : i32, i32
  }
  func.func @transform_3(%arg0: i32) -> (i32, i32) {
    %c0_i32 = arith.constant 0 : i32
    %c0_i32_0 = arith.constant 0 : i32
    return %arg0, %c0_i32 : i32, i32
  }
}

</mosaic_0001>

<bundles_post_ra>
// kernel: tpu_custom_call.1
= control target key start
LH: loop header
LB: loop body
LE: loop exit
PB: predicated region body
PF: predicated region fallthrough
CT: control target
= control target key end

     0   :  { %9 = vsyncpa [#allocation3], 0  ;;  %s370_s0 = inlined_call_operand.hbm [shape: f32[2,8,32], index: 0, kind: input, shape index: {}]   ;;  %s371_s1 = inlined_call_operand.vmem [shape: f32[1,32], index: 1, kind: input, shape index: {}]   ;;  %s372_s2 = inlined_call_operand.hbm [shape: f32[2,32], index: 2, kind: output, shape index: {0}]   ;;  %s373_s3 = inlined_call_operand.hbm [shape: f32[2,8], index: 3, kind: output, shape index: {1}]  }
   0x1   :  { %10 = vsyncpa [#allocation4], 0 }
   0x2   :  { %11 = vsyncpa [#allocation7], 0  ;;  %s286_s12 = smov [#allocation2]   ;;  %s214_s16 = scalar_lea.hbm %s370_s0, 256 }
   0x3   :  { %s17_s13 = sshll.u32 %s286_s12, 4  ;;  %p215_p0 = scmp.ne.s32.totalorder %s370_s0, %s214_s16  ;;  %s18_s13 = int_to_ptr.vmem [resolvable:$true] %s17_s13 }
   0x4   :  { %p218_p1 = scmp.lt.u32.totalorder %s214_s16, %s370_s0 }
   0x6   :  { %p220_p2 = pnand %p218_p1, %p215_p0 }
   0x8   :  { %223 = shalt.err (!%p220_p2)
}
   0x9   :  { %s224_s21 = scalar_lea.vmem %s18_s13, 256  ;;  %p229_p4 = scmp.lt.s32.totalorder %s18_s13, %s18_s13 }
   0xa   :  { %p225_p3 = scmp.ne.s32.totalorder %s18_s13, %s224_s21  ;;  %p230_p5 = scmp.lt.s32.totalorder %s224_s21, %s224_s21 }
   0xc   :  { %p231_p6 = por %p230_p5, %p229_p4 }
   0xe   :  { %p232_p7 = pnand %p231_p6, %p225_p3 }
  0x10   :  { %235 = shalt.err (!%p232_p7)
}
  0x11   :  { %s287_s22 = smov 128   ;;  %s288_s23 = smov 8  }
  0x12   :  { %23 = dma.hbm_to_vmem [thread:$0]  %s370_s0, 256, %s18_s13, [#allocation3], %s287_s22, %s287_s22, %s288_s23  }
  0x13   :  { %280 = dma.done.wait [#allocation3], 256  }
  0x14   :  { %281 = vsyncadd [#allocation3], 4294967040  ;;  %v324_v0 = vld [vmem:[#allocation2] sm:$0xff]  ;;  %v326_v1 = vld [vmem:[#allocation2 + $0x8] sm:$0xff]  ;;  %vm42_vm0 = vcmask 261120   ;;  %v51_v9 = vlaneseq  ;;  %vm61_vm1 = vcmask 1041409  }
  0x15   :  { %204 = vtanh.f32 %v324_v0  ;;  %v195_v2 = vld [vmem:[%s371_s1] ss:$0 sm:$0xff]  ;;  %vm64_vm2 = vcmask 58368   ;;  %v289_v19 = vmov 0   ;;  %s290_s0 = smov [#allocation6]  }
  0x16   :  { %206 = vtanh.f32 %v326_v1  ;;  %v52_v10 = vand.u32 127, %v51_v9  ;;  %v54_v11 = vshrl.u32 %v51_v9, 7  ;;  %203 = vset.pattern.permute.xlu0 %v289_v19  ;;  %202 = vset.pattern.permute.xlu1 %v289_v19  ;;  %s182_s1 = sshll.u32 %s290_s0, 4  ;;  %s183_s1 = int_to_ptr.vmem [resolvable:$true] %s182_s1 }
  0x17   :  { %s236_s28 = scalar_lea.vmem %s183_s1, 32  ;;  %p241_p9 = scmp.lt.s32.totalorder %s183_s1, %s183_s1 }
  0x18   :  { %v55_v13 = vsub.s32 %v52_v10, %v54_v11  ;;  %v71_v20 = vsub.s32 0, %v54_v11  ;;  %v75_v21 = vsub.s32 1, %v54_v11  ;;  %p237_p8 = scmp.ne.s32.totalorder %s183_s1, %s236_s28  ;;  %p242_p10 = scmp.lt.s32.totalorder %s236_s28, %s236_s28 }
  0x1a   :  { %p243_p11 = por %p242_p10, %p241_p9 }
  0x1c   :  { %p244_p12 = pnand %p243_p11, %p237_p8 }
  0x1f   :  { %v205_v3 = vpop.eup %204 }
  0x20   :  { %v207_v4 = vpop.eup %206  ;;  %v40_v5 = vmul.f32 %v205_v3, %v195_v2 }
  0x21   :  { %v41_v6 = vmul.f32 %v207_v4, %v195_v2 }
  0x22   :  { %v43_v7 = vsel %vm42_vm0, %v40_v5, 0.0 }
  0x23   :  { %44 = vadd.xlane.f32.xlu0 %v43_v7  ;;  %v46_v8 = vsel %vm42_vm0, %v41_v6, 0.0 }
  0x27   :  { %47 = vadd.xlane.f32.xlu0 %v46_v8 }
  0xb0   :  { %v45_v12 = vpop.xlane.xlu0 %44 }
  0xb1   :  { %v56_v15 = vrot.slane %v45_v12, %v55_v13 }
  0xb4   :  { %v48_v14 = vpop.xlane.xlu0 %47 }
  0xb5   :  { %v60_v16 = vrot.slane %v48_v14, %v55_v13 }
  0xb7   :  { %v62_v17 = vsel %vm61_vm1, %v60_v16, %v56_v15 }
  0xb8   :  { %v65_v18 = vsel %vm64_vm2, %v62_v17, -inf }
  0xb9   :  { %66 = vmax.xlane.f32.xlu1 %v65_v18 }
 0x146   :  { %v67_v22 = vpop.xlane.xlu1 %66 }
 0x147   :  { %v72_v23 = vrot.slane %v67_v22, %v71_v20  ;;  %v76_v24 = vrot.slane %v67_v22, %v75_v21 }
 0x149   :  { %v79_v25 = vsub.f32 %v45_v12, %v72_v23  ;;  %v80_v26 = vsub.f32 %v48_v14, %v76_v24 }
 0x14b   :  { %v81_v27 = vmul.f32 1.442695, %v79_v25  ;;  %v83_v28 = vmul.f32 1.442695, %v80_v26 }
 0x14d   :  { %208 = vpow2.f32 %v81_v27 }
 0x14e   :  { %210 = vpow2.f32 %v83_v28 }
 0x157   :  { %v209_v29 = vpop.eup %208 }
 0x158   :  { %v211_v30 = vpop.eup %210  ;;  %88 = vperm.xlu1 %202, %v209_v29  }
 0x159   :  { %91 = vperm.xlu0 %203, %v211_v30  }
 0x1d7   :  { %v89_v31 = vpop.permute.xlu1 %88 }
 0x1d8   :  { %v92_v32 = vpop.permute.xlu0 %91  ;;  %v96_v33 = vrot.slane %v89_v31, %v55_v13 }
 0x1d9   :  { %v100_v34 = vrot.slane %v92_v32, %v55_v13 }
 0x1db   :  { %v101_v35 = vsel %vm61_vm1, %v100_v34, %v96_v33 }
 0x1dc   :  { %v103_v36 = vsel %vm64_vm2, %v101_v35, 0.0 }
 0x1dd   :  { %104 = vadd.xlane.f32.xlu1 %v103_v36 }
 0x26a   :  { %v105_v37 = vpop.xlane.xlu1 %104 }
 0x26b   :  { %212 = vrcp.f32 %v105_v37 }
 0x275   :  { %v213_v38 = vpop.eup %212 }
 0x276   :  { %v107_v39 = vmul.f32 %v213_v38, %v105_v37 }
 0x278   :  { %v108_v40 = vsub.f32 2.0, %v107_v39 }
 0x27a   :  { %v109_v41 = vmul.f32 %v213_v38, %v108_v40 }
 0x27c   :  { %v114_v42 = vrot.slane %v109_v41, %v71_v20  ;;  %v118_v43 = vrot.slane %v109_v41, %v75_v21 }
 0x27e   :  { %v121_v44 = vmul.f32 %v209_v29, %v114_v42  ;;  %v122_v45 = vmul.f32 %v211_v30, %v118_v43 }
 0x280   :  { %125 = vperm.xlu0 %203, %v121_v44  }
 0x284   :  { %130 = vperm.xlu0 %203, %v122_v45  }
 0x2ff   :  { %v126_v46 = vpop.permute.xlu0 %125 }
 0x300   :  { %v133_v47 = vmul.f32 %v126_v46, %v324_v0  ;;  %v158_v51 = vrot.slane %v126_v46, %v55_v13 }
 0x302   :  { %v135_v48 = vsel %vm42_vm0, %v133_v47, 0.0 }
 0x303   :  { %v136_v49 = vrot.slane %v135_v48, 4  ;;  %v131_v50 = vpop.permute.xlu0 %130 }
 0x304   :  { %v134_v52 = vmul.f32 %v131_v50, %v326_v1  ;;  %v162_v53 = vrot.slane %v131_v50, %v55_v13 }
 0x305   :  { %v137_v54 = vadd.f32 %v136_v49, %v135_v48 }
 0x306   :  { %v142_v55 = vsel %vm42_vm0, %v134_v52, 0.0  ;;  %v163_v56 = vsel %vm61_vm1, %v162_v53, %v158_v51 }
 0x307   :  { %v138_v57 = vrot.slane %v137_v54, 2  ;;  %v143_v58 = vrot.slane %v142_v55, 4  ;;  %165 = vst.msk [vmem:[#allocation6] sm:$0x3] %vm64_vm2, %v163_v56 }
 0x308   :  { %247 = shalt.err (!%p244_p12)
}
 0x309   :  { %s248_s4 = scalar_lea.hbm %s373_s3, 32 }
 0x30a   :  { %p249_p13 = scmp.ne.s32.totalorder %s373_s3, %s248_s4  ;;  %p252_p0 = scmp.lt.u32.totalorder %s248_s4, %s373_s3 }
 0x30c   :  { %p254_p1 = pnand %p252_p0, %p249_p13 }
 0x30e   :  { %257 = shalt.err (!%p254_p1)
}
 0x30f   :  { %185 = dma.vmem_to_hbm [thread:$0]  %s183_s1, 32, %s373_s3, [#allocation7]   ;;  %v139_v59 = vadd.f32 %v138_v57, %v137_v54  ;;  %v144_v60 = vadd.f32 %v143_v58, %v142_v55  ;;  %vm153_vm3 = vcmask 254976  }
 0x310   :  { %s291_s11 = smov [#allocation5]  }
 0x311   :  { %v145_v61 = vrot.slane %v144_v60, 2  ;;  %v140_v62 = vrot.slane %v139_v59, 1  ;;  %s172_s12 = sshll.u32 %s291_s11, 4  ;;  %s173_s12 = int_to_ptr.vmem [resolvable:$true] %s172_s12 }
 0x312   :  { %s258_s13 = scalar_lea.vmem %s173_s12, 32  ;;  %p263_p3 = scmp.lt.s32.totalorder %s173_s12, %s173_s12 }
 0x313   :  { %v146_v63 = vadd.f32 %v145_v61, %v144_v60  ;;  %v141_v2 = vadd.f32 %v140_v62, %v139_v59  ;;  %p259_p2 = scmp.ne.s32.totalorder %s173_s12, %s258_s13  ;;  %p264_p4 = scmp.lt.s32.totalorder %s258_s13, %s258_s13 }
 0x315   :  { %v147_v0 = vrot.slane %v146_v63, 1  ;;  %p265_p5 = por %p264_p4, %p263_p3 }
 0x317   :  { %v148_v1 = vadd.f32 %v147_v0, %v146_v63  ;;  %p266_p6 = pnand %p265_p5, %p259_p2 }
 0x319   :  { %v151_v3 = vsel %vm61_vm1, %v148_v1, %v141_v2 }
 0x31a   :  { %154 = vst.msk [vmem:[#allocation5] sm:$0x3] %vm153_vm3, %v151_v3 }
 0x31b   :  { %269 = shalt.err (!%p266_p6)
}
 0x31c   :  { %s270_s15 = scalar_lea.hbm %s372_s2, 32 }
 0x31d   :  { %p271_p7 = scmp.ne.s32.totalorder %s372_s2, %s270_s15  ;;  %p274_p8 = scmp.lt.u32.totalorder %s270_s15, %s372_s2 }
 0x31f   :  { %p276_p9 = pnand %p274_p8, %p271_p7 }
 0x321   :  { %279 = shalt.err (!%p276_p9)
}
 0x322   :  { %175 = dma.vmem_to_hbm [thread:$0]  %s173_s12, 32, %s372_s2, [#allocation4]  }
 0x323   :  { %282 = dma.done.wait [#allocation4], 32  }
 0x324   :  { %283 = vsyncadd [#allocation4], 4294967264 }
 0x325   :  { %284 = dma.done.wait [#allocation7], 32  }
 0x326   :  { %285 = vsyncadd [#allocation7], 4294967264 }
 0x327   :  { %192 = vsyncpa [#allocation3], 1 }
 0x328   :  { %193 = vsyncpa [#allocation4], 1 }
 0x329   :  { %194 = vsyncpa [#allocation7], 1 }

</bundles_post_ra>
